<compile_context>
chip_gen: v7x
topology: tpu7x:2x2x1
jax: 0.10.0
libtpu: 0.0.40
codegen_flags: <defaults>
</compile_context>

<pallas_src>
import functools

import jax
import jax.numpy as jnp
from jax.experimental import pallas as pl
from jax.experimental.pallas import tpu as pltpu


# ----------------------------- activations ---------------------------------
def _apply_activation(h, activation):
    # h is f32 here (accumulator dtype) -> safe transcendentals on all chips.
    if activation == "relu":
        return jnp.maximum(h, 0.0)
    elif activation == "tanh":
        return jnp.tanh(h)
    elif activation == "leaky_relu":
        return jnp.where(h >= 0.0, h, 0.01 * h)
    elif activation == "elu":
        # clamp the untaken branch so expm1 never overflows (alpha = 1.0)
        return jnp.where(h >= 0.0, h, jnp.expm1(jnp.minimum(h, 0.0)))
    elif activation == "swish":
        return h * jax.nn.sigmoid(h)
    elif activation == "gelu":
        # exact erf to match nn.GELU() bit-for-bit; switch to approximate=True
        # (tanh form, rides the EUP slot) if parity with PyTorch is not needed.
        return jax.nn.gelu(h, approximate=False)
    else:
        raise ValueError("Unsupported activation function.")


# ------------------------------- kernel -------------------------------------
def _mlp_kernel(*refs, num_layers, activation):
    """refs = (x_ref, w0, b0, w1, b1, ..., w_{L-1}, b_{L-1}, out_ref).

    x_ref   : [input_size, batch_tile]   (batch on lanes), compute dtype
    w_ref   : [out_l, in_l]              PyTorch layout, compute dtype
    b_ref   : [out_l, 1]                 float32
    out_ref : [output_size, batch_tile]  float32
    """
    x_ref = refs[0]
    out_ref = refs[-1]
    wb_refs = refs[1:-1]

    h = x_ref[...]  # [in, bt], compute dtype
    for layer in range(num_layers):
        w = wb_refs[2 * layer][...]        # [out, in]
        b = wb_refs[2 * layer + 1][...]    # [out, 1] f32
        acc = jnp.dot(w, h.astype(w.dtype), preferred_element_type=jnp.float32)
        acc = acc + b                      # broadcasts over the lane (batch) axis
        if layer < num_layers - 1:
            acc = _apply_activation(acc, activation)
            h = acc.astype(w.dtype)        # back to compute dtype for next MXU pass
        else:
            h = acc
    out_ref[...] = h.astype(out_ref.dtype)


# --------------------------- batch-tile selection ----------------------------
def _choose_batch_tile(B):
    """Pick a lane-aligned batch tile that gives a multi-step grid."""
    if B % 128 != 0:
        return B  # full-batch block (block == full dim satisfies tiling rule)
    for t in (2048, 1024, 512, 256, 128):
        if B % t == 0 and B // t >= 2:
            return t
    return min(B, 128) if B % 128 == 0 else B


# ------------------------------- wrapper -------------------------------------
def tabular_net_forward(x, params, activation="relu", batch_tile=None,
                        compute_dtype=jnp.float32):
    """
    x       : [B, input_size] float32
    params  : list of (W, b), PyTorch layout: W [out, in], b [out]
    returns : [B, output_size] float32
    """
    B, input_size = x.shape
    num_layers = len(params)
    output_size = params[-1][0].shape[0]

    if batch_tile is None:
        batch_tile = _choose_batch_tile(B)
    assert B % batch_tile == 0
    assert batch_tile == B or batch_tile % 128 == 0, (
        "batch_tile must be a multiple of 128 (lane width) or the full batch")

    # ---- layout plumbing (outside the kernel): batch onto the lane axis ----
    x_t = x.T.astype(compute_dtype)  # [input_size, B]

    flat_args = []
    in_specs = [pl.BlockSpec((input_size, batch_tile), lambda i: (0, i))]
    for (w, b) in params:
        w_c = w.astype(compute_dtype)            # [out, in]
        b2 = b.astype(jnp.float32).reshape(-1, 1)  # [out, 1]
        flat_args.append(w_c)
        flat_args.append(b2)
        # index_map -> (0, 0): same block every grid step => stays resident.
        in_specs.append(pl.BlockSpec(w_c.shape, lambda i: (0, 0)))
        in_specs.append(pl.BlockSpec(b2.shape, lambda i: (0, 0)))

    # ---- VMEM budget: double-buffered x/out tiles + resident weights -------
    cbytes = jnp.dtype(compute_dtype).itemsize
    widths = [input_size] + [w.shape[0] for (w, _) in params]
    tile_bytes = 2 * batch_tile * (input_size * cbytes + output_size * 4)
    weight_bytes = sum(2 * (w.size * cbytes + b.size * 4) for (w, b) in params)
    inter_bytes = 4 * batch_tile * max(widths) * 4  # f32 intermediates headroom
    vmem_limit = int(1.5 * (tile_bytes + weight_bytes + inter_bytes)) + (1 << 20)
    vmem_limit = min(max(vmem_limit, 32 << 20), 64 << 20)

    kernel = functools.partial(
        _mlp_kernel, num_layers=num_layers, activation=activation
    )

    out_t = pl.pallas_call(
        kernel,
        out_shape=jax.ShapeDtypeStruct((output_size, B), jnp.float32),
        grid_spec=pltpu.PrefetchScalarGridSpec(
            num_scalar_prefetch=0,
            grid=(B // batch_tile,),
            in_specs=in_specs,
            out_specs=pl.BlockSpec((output_size, batch_tile), lambda i: (0, i)),
        ),
        compiler_params=pltpu.CompilerParams(
            dimension_semantics=("parallel",),   # megacore batch sharding on v7x
            vmem_limit_bytes=vmem_limit,
        ),
    )(x_t, *flat_args)

    return out_t.T  # back to [B, output_size]


# -------------------------- deterministic init -------------------------------
def init_params(key, input_size, hidden_sizes, output_size):
    """PyTorch nn.Linear init: U(-1/sqrt(fan_in), 1/sqrt(fan_in)); W: [out, in]."""
    sizes = [input_size] + list(hidden_sizes) + [output_size]
    params = []
    for i in range(len(sizes) - 1):
        fan_in, fan_out = sizes[i], sizes[i + 1]
        key, kw, kb = jax.random.split(key, 3)
        bound = 1.0 / jnp.sqrt(jnp.float32(fan_in))
        w = jax.random.uniform(kw, (fan_out, fan_in), jnp.float32, -bound, bound)
        b = jax.random.uniform(kb, (fan_out,), jnp.float32, -bound, bound)
        params.append((w, b))
    return params


def reference_forward(x, params, activation):
    h = x
    for i, (w, b) in enumerate(params):
        h = h @ w.T + b
        if i < len(params) - 1:
            h = _apply_activation(h, activation)
    return h


# --------------------------------- main --------------------------------------
if __name__ == "__main__":
    input_size = 16
    hidden_sizes = [32, 32]
    output_size = 4
    batch = 512            # small, but enough for a multi-step grid (tile=256)
    activation = "relu"

    key = jax.random.PRNGKey(0)
    key, kx = jax.random.split(key)
    x = jax.random.normal(kx, (batch, input_size), jnp.float32)
    params = init_params(key, input_size, hidden_sizes, output_size)

    # f32 compute for bit-parity with the reference; pass
    # compute_dtype=jnp.bfloat16 on v6e/v7x for the bandwidth/MXU win.
    out = tabular_net_forward(x, params, activation=activation)
    out = jax.block_until_ready(out)

    ref = reference_forward(x, params, activation)
    assert out.shape == (batch, output_size)
    assert jnp.allclose(out, ref, atol=1e-5, rtol=1e-5), "mismatch vs reference"

    print("KERNEL_OK")
</pallas_src>

<mosaic_0001>
module attributes {stable_mosaic.version = 11 : i64} {
  func.func @_mlp_kernel(%arg0: i32, %arg1: memref<16x256xf32, #tpu.memory_space<vmem>>, %arg2: memref<32x16xf32, #tpu.memory_space<vmem>>, %arg3: memref<32x1xf32, #tpu.memory_space<vmem>>, %arg4: memref<32x32xf32, #tpu.memory_space<vmem>>, %arg5: memref<32x1xf32, #tpu.memory_space<vmem>>, %arg6: memref<4x32xf32, #tpu.memory_space<vmem>>, %arg7: memref<4x1xf32, #tpu.memory_space<vmem>>, %arg8: memref<4x256xf32, #tpu.memory_space<vmem>>) attributes {dimension_semantics = [#tpu.dimension_semantics<parallel>], iteration_bounds = array<i64: 2>, scalar_prefetch = 0 : i64, scratch_operands = 0 : i64, tpu.core_type = #tpu.core_type<tc>, window_params = [{transform_indices = @transform_0, window_bounds = array<i64: 16, 256>}, {pipeline_mode = #tpu.pipeline_mode<synchronous>, transform_indices = @transform_1, window_bounds = array<i64: 32, 16>}, {pipeline_mode = #tpu.pipeline_mode<synchronous>, transform_indices = @transform_2, window_bounds = array<i64: 32, 1>}, {pipeline_mode = #tpu.pipeline_mode<synchronous>, transform_indices = @transform_3, window_bounds = array<i64: 32, 32>}, {pipeline_mode = #tpu.pipeline_mode<synchronous>, transform_indices = @transform_4, window_bounds = array<i64: 32, 1>}, {pipeline_mode = #tpu.pipeline_mode<synchronous>, transform_indices = @transform_5, window_bounds = array<i64: 4, 32>}, {pipeline_mode = #tpu.pipeline_mode<synchronous>, transform_indices = @transform_6, window_bounds = array<i64: 4, 1>}, {transform_indices = @transform_7, window_bounds = array<i64: 4, 256>}]} {
    %c0 = arith.constant 0 : index
    %c0_0 = arith.constant 0 : index
    %0 = vector.load %arg1[%c0, %c0_0] : memref<16x256xf32, #tpu.memory_space<vmem>>, vector<16x256xf32>
    %c0_1 = arith.constant 0 : index
    %c0_2 = arith.constant 0 : index
    %1 = vector.load %arg2[%c0_1, %c0_2] : memref<32x16xf32, #tpu.memory_space<vmem>>, vector<32x16xf32>
    %c0_3 = arith.constant 0 : index
    %c0_4 = arith.constant 0 : index
    %2 = vector.load %arg3[%c0_3, %c0_4] : memref<32x1xf32, #tpu.memory_space<vmem>>, vector<32x1xf32>
    %cst = arith.constant dense<0.000000e+00> : vector<32x256xf32>
    %3 = tpu.matmul %1, %0, %cst {dimension_numbers = #tpu.dot_dimension_numbers<[1], [0], [0], [1], [0, 0, 1, 1], [], []>} : vector<32x16xf32>, vector<16x256xf32>, vector<32x256xf32> -> vector<32x256xf32>
    %4 = vector.broadcast %2 : vector<32x1xf32> to vector<32x256xf32>
    %5 = arith.addf %3, %4 : vector<32x256xf32>
    %cst_5 = arith.constant 0.000000e+00 : f32
    %6 = vector.broadcast %cst_5 : f32 to vector<32x256xf32>
    %7 = arith.maximumf %5, %6 : vector<32x256xf32>
    %c0_6 = arith.constant 0 : index
    %c0_7 = arith.constant 0 : index
    %8 = vector.load %arg4[%c0_6, %c0_7] : memref<32x32xf32, #tpu.memory_space<vmem>>, vector<32x32xf32>
    %c0_8 = arith.constant 0 : index
    %c0_9 = arith.constant 0 : index
    %9 = vector.load %arg5[%c0_8, %c0_9] : memref<32x1xf32, #tpu.memory_space<vmem>>, vector<32x1xf32>
    %cst_10 = arith.constant dense<0.000000e+00> : vector<32x256xf32>
    %10 = tpu.matmul %8, %7, %cst_10 {dimension_numbers = #tpu.dot_dimension_numbers<[1], [0], [0], [1], [0, 0, 1, 1], [], []>} : vector<32x32xf32>, vector<32x256xf32>, vector<32x256xf32> -> vector<32x256xf32>
    %11 = vector.broadcast %9 : vector<32x1xf32> to vector<32x256xf32>
    %12 = arith.addf %10, %11 : vector<32x256xf32>
    %cst_11 = arith.constant 0.000000e+00 : f32
    %13 = vector.broadcast %cst_11 : f32 to vector<32x256xf32>
    %14 = arith.maximumf %12, %13 : vector<32x256xf32>
    %c0_12 = arith.constant 0 : index
    %c0_13 = arith.constant 0 : index
    %15 = vector.load %arg6[%c0_12, %c0_13] : memref<4x32xf32, #tpu.memory_space<vmem>>, vector<4x32xf32>
    %c0_14 = arith.constant 0 : index
    %c0_15 = arith.constant 0 : index
    %16 = vector.load %arg7[%c0_14, %c0_15] : memref<4x1xf32, #tpu.memory_space<vmem>>, vector<4x1xf32>
    %cst_16 = arith.constant dense<0.000000e+00> : vector<4x256xf32>
    %17 = tpu.matmul %15, %14, %cst_16 {dimension_numbers = #tpu.dot_dimension_numbers<[1], [0], [0], [1], [0, 0, 1, 1], [], []>} : vector<4x32xf32>, vector<32x256xf32>, vector<4x256xf32> -> vector<4x256xf32>
    %18 = vector.broadcast %16 : vector<4x1xf32> to vector<4x256xf32>
    %19 = arith.addf %17, %18 : vector<4x256xf32>
    %c0_17 = arith.constant 0 : index
    %c0_18 = arith.constant 0 : index
    %20 = vector.load %arg8[%c0_17, %c0_18] : memref<4x256xf32, #tpu.memory_space<vmem>>, vector<4x256xf32>
    tpu.vector_store %arg8[%c0_17, %c0_18], %19 {strides = array<i32>} : memref<4x256xf32, #tpu.memory_space<vmem>>, vector<4x256xf32>,
    return
  }
  func.func @transform_0(%arg0: i32) -> (i32, i32) {
    %c0_i32 = arith.constant 0 : i32
    %c0_i32_0 = arith.constant 0 : i32
    return %c0_i32, %arg0 : i32, i32
  }
  func.func @transform_1(%arg0: i32) -> (i32, i32) {
    %c0_i32 = arith.constant 0 : i32
    %c0_i32_0 = arith.constant 0 : i32
    %c0_i32_1 = arith.constant 0 : i32
    return %c0_i32, %c0_i32_0 : i32, i32
  }
  func.func @transform_2(%arg0: i32) -> (i32, i32) {
    %c0_i32 = arith.constant 0 : i32
    %c0_i32_0 = arith.constant 0 : i32
    %c0_i32_1 = arith.constant 0 : i32
    return %c0_i32, %c0_i32_0 : i32, i32
  }
  func.func @transform_3(%arg0: i32) -> (i32, i32) {
    %c0_i32 = arith.constant 0 : i32
    %c0_i32_0 = arith.constant 0 : i32
    %c0_i32_1 = arith.constant 0 : i32
    return %c0_i32, %c0_i32_0 : i32, i32
  }
  func.func @transform_4(%arg0: i32) -> (i32, i32) {
    %c0_i32 = arith.constant 0 : i32
    %c0_i32_0 = arith.constant 0 : i32
    %c0_i32_1 = arith.constant 0 : i32
    return %c0_i32, %c0_i32_0 : i32, i32
  }
  func.func @transform_5(%arg0: i32) -> (i32, i32) {
    %c0_i32 = arith.constant 0 : i32
    %c0_i32_0 = arith.constant 0 : i32
    %c0_i32_1 = arith.constant 0 : i32
    return %c0_i32, %c0_i32_0 : i32, i32
  }
  func.func @transform_6(%arg0: i32) -> (i32, i32) {
    %c0_i32 = arith.constant 0 : i32
    %c0_i32_0 = arith.constant 0 : i32
    %c0_i32_1 = arith.constant 0 : i32
    return %c0_i32, %c0_i32_0 : i32, i32
  }
  func.func @transform_7(%arg0: i32) -> (i32, i32) {
    %c0_i32 = arith.constant 0 : i32
    %c0_i32_0 = arith.constant 0 : i32
    return %c0_i32, %arg0 : i32, i32
  }
}

</mosaic_0001>

<bundles_post_ra>
// kernel: tpu_custom_call.1
= control target key start
LH: loop header
LB: loop body
LE: loop exit
PB: predicated region body
PF: predicated region fallthrough
CT: control target
= control target key end

     0   :  { %12 = vsyncpa [#allocation4], 0  ;;  %s1128_s0 = inlined_call_operand.vmem [shape: f32[16,512], index: 0, kind: input, shape index: {}]   ;;  %s1129_s1 = inlined_call_operand.vmem [shape: f32[32,16], index: 1, kind: input, shape index: {}]   ;;  %s1130_s2 = inlined_call_operand.vmem [shape: f32[32,1], index: 2, kind: input, shape index: {}]   ;;  %s1131_s3 = inlined_call_operand.vmem [shape: f32[32,32], index: 3, kind: input, shape index: {}]   ;;  %s1132_s4 = inlined_call_operand.vmem [shape: f32[32,1], index: 4, kind: input, shape index: {}]   ;;  %s1133_s5 = inlined_call_operand.vmem [shape: f32[4,32], index: 5, kind: input, shape index: {}]   ;;  %s1134_s6 = inlined_call_operand.vmem [shape: f32[4,1], index: 6, kind: input, shape index: {}]   ;;  %s1135_s7 = inlined_call_operand.hbm [shape: f32[4,512], index: 7, kind: output, shape index: {}]  }
   0x1   :  { %14 = vsyncpa [#allocation4 + $0x1], 0  ;;  %s946_s24 = smov 0   ;;  %s948_s25 = smov 0  }
   0x2   :  { %s950_s26 = smov 0   ;;  %s952_s27 = smov 0  }
   0x3 LB: > { %s750_s28 = sadd.s32 4294967295, %s901_s27   ;;  %s751_s29 = sadd.s32 4294967294, %s901_s27   ;;  %s901_s27 = sphi %s952_s27, %s1141_s27   ;;  %s897_s26 = sphi %s950_s26, %s1140_s26   ;;  %s893_s25 = sphi %s948_s25, %s1139_s25   ;;  %s889_s24 = sphi %s946_s24, %s1138_s24  }
   0x4   : > { %s969_s30 = sadd.s32 1, %s901_s27   ;;  %s27_s8 = sadd.s32 1, %s897_s26 }
   0x5   : > { %s24_s9 = ssub.s32 %s901_s27, %s969_s30  ;;  %p34_p0 = scmp.ne.s32.totalorder %s897_s26, %s893_s25 }
   0x6   : > { %p25_p1 = scmp.eq.s32.totalorder %s24_s9, 0  ;;  %p35_p2 = scmp.eq.s32.totalorder %s901_s27, 0 }
   0x7   : > { %p190_p3 = scmp.eq.s32.totalorder %s750_s28, 1  ;;  %p195_p4 = scmp.ne.s32.totalorder %s893_s25, %s889_s24 }
   0x8   : > { %s982_s10 = scalar_select %p25_p1, %s897_s26, %s27_s8  }
   0x9   : > { %p36_p5 = por %p35_p2, %p34_p0  ;;  %p984_p6 = por %p190_p3, %p34_p0 }
   0xa   : > { %p196_p7 = scmp.eq.s32.totalorder %s751_s29, 1  ;;  %p753_p9 = scmp.ge.s32.totalorder %s901_s27, 2 }
   0xc   : > { %p988_p8 = por %p196_p7, %p195_p4  ;;  %230 = sbr.rel (%p753_p9) target bundleno = 26 (0x1a), region = 40 }
  0x13   : > { %233 = sbr.rel (!%p36_p5) target bundleno = 26 (0x1a), region = 44  ;;  %s235_s13 = sand.u32 (%p36_p5), 1, %s897_s26  }
  0x14   : > { %s774_s14 = sshll.u32 (%p36_p5), %s901_s27, 4  ;;  %s754_s15 = sshll.u32 (%p36_p5), %s235_s13, 5 }
  0x15   : > { %s240_s18 = scalar_lea.vmem (%p36_p5), %s1128_s0, %s774_s14  ;;  %s237_s19 = scalar_lea.vmem (%p36_p5), [#allocation2], %s754_s15 }
  0x16   : > { %v253_v0 = vld [vmem:[%s240_s18] sm:$0xff] (%p36_p5)  ;;  %v255_v1 = vld [vmem:[%s240_s18 + $0x8] sm:$0xff] (%p36_p5) }
  0x17   : > { %v257_v2 = vld [vmem:[%s240_s18 + $0x20] sm:$0xff] (%p36_p5)  ;;  %254 = vst [vmem:[%s237_s19] sm:$0xff] (%p36_p5), %v253_v0  ;;  %256 = vst [vmem:[%s237_s19 + $0x8] sm:$0xff] (%p36_p5), %v255_v1  ;;  %v259_v3 = vld [vmem:[%s240_s18 + $0x28] sm:$0xff] (%p36_p5) }
  0x18   : > { %258 = vst [vmem:[%s237_s19 + $0x10] sm:$0xff] (%p36_p5), %v257_v2  ;;  %260 = vst [vmem:[%s237_s19 + $0x18] sm:$0xff] (%p36_p5), %v259_v3 }
  0x1a PF: > { %p757_p10 = scmp.ge.s32.totalorder %s901_s27, 1  ;;  %p265_p11 = scmp.lt.s32.totalorder %s901_s27, 3 }
  0x1c   : > { %p266_p12 = pnand %p757_p10, %p265_p11 }
  0x1d   : > { %s1003_s20 = sand.u32 (!%p266_p12), 1, %s893_s25   ;;  %v903_v4 = vmov (!%p266_p12), 0.0   ;;  %v313_v5 = vld [vmem:[%s1130_s2] sm:$0xff] (!%p266_p12)  ;;  %v904_v6 = vmov (!%p266_p12), 0   ;;  %v315_v7 = vld [vmem:[%s1130_s2 + $0x10] sm:$0xff] (!%p266_p12)  ;;  %v314_v13 = vld [vmem:[%s1130_s2 + $0x8] sm:$0xff] (!%p266_p12) }
  0x1e   : > { %269 = sbr.rel (%p266_p12) target bundleno = 740 (0x2e4), region = 67  ;;  %s758_s21 = sshll.u32 (!%p266_p12), %s1003_s20, 5  ;;  %414 = vmatprep.mubr.f32.mxu0 (!%p266_p12), %v903_v4  ;;  %552 = vmatprep.mubr.f32.mxu1 (!%p266_p12), %v903_v4  ;;  %v316_v15 = vld [vmem:[%s1130_s2 + $0x18] sm:$0xff] (!%p266_p12)  ;;  %v309_v16 = vld [vmem:[%s1129_s1] sm:$0xff] (!%p266_p12)  ;;  %vm337_vm0 = vcmask (!%p266_p12), 130048   ;;  %v452_v18 = vld [vmem:[%s1132_s4 + $0x8] sm:$0xff] (!%p266_p12) }
  0x1f   : > { %837 = vset.pattern.permute.xlu0 (!%p266_p12), %v904_v6  ;;  %838 = vset.pattern.permute.xlu1 (!%p266_p12), %v904_v6  ;;  %s274_s9 = scalar_lea.vmem (!%p266_p12), [#allocation2], %s758_s21  ;;  %v451_v17 = vld [vmem:[%s1132_s4] sm:$0xff] (!%p266_p12)  ;;  %v310_v19 = vld [vmem:[%s1129_s1 + $0x8] sm:$0xff] (!%p266_p12)  ;;  %v453_v20 = vld [vmem:[%s1132_s4 + $0x10] sm:$0xff] (!%p266_p12)  ;;  %vm475_vm1 = vcmask (!%p266_p12), 261120   ;;  %s759_s19 = sshll.u32 (!%p266_p12), %s1003_s20, 3 }
  0x20   : > { %v306_v8 = vld [vmem:[%s274_s9 + $0x8] sm:$0xff] (!%p266_p12)  ;;  %v308_v9 = vld [vmem:[%s274_s9 + $0x18] sm:$0xff] (!%p266_p12)  ;;  %v305_v10 = vld [vmem:[%s274_s9] sm:$0xff] (!%p266_p12)  ;;  %319 = vperm.xlu0 (!%p266_p12), %837, %v313_v5   ;;  %329 = vperm.xlu1 (!%p266_p12), %838, %v315_v7   ;;  %s775_s21 = sshll.u32 (!%p266_p12), %s750_s28, 7  ;;  %s302_s22 = scalar_lea.vmem (!%p266_p12), [#allocation3], %s759_s19 }
  0x21   : > { %v776_v11 = vpack.c.bf16 (!%p266_p12), %v308_v9, %v306_v8  ;;  %v307_v12 = vld [vmem:[%s274_s9 + $0x10] sm:$0xff] (!%p266_p12)  ;;  %v454_v21 = vld [vmem:[%s1132_s4 + $0x18] sm:$0xff] (!%p266_p12)  ;;  %v586_v23 = vld [vmem:[%s1134_s6] sm:$0xf] (!%p266_p12)  ;;  %s686_s23 = sshll.u32 (!%p266_p12), %s302_s22, 4  ;;  %s1084_s9 = scalar_lea.hbm (!%p266_p12), %s1135_s7, %s775_s21  ;;  %s1086_s23 = int_to_ptr.vmem [resolvable:$true] %s686_s23 }
  0x22   : > { %v778_v14 = vpack.c.bf16 (!%p266_p12), %v307_v12, %v305_v10  ;;  %v311_v22 = vld [vmem:[%s1129_s1 + $0x10] sm:$0xff] (!%p266_p12)  ;;  %v312_v24 = vld [vmem:[%s1129_s1 + $0x18] sm:$0xff] (!%p266_p12)  ;;  %v447_v57 = vld [vmem:[%s1131_s3] sm:$0xff] (!%p266_p12)  ;;  %s672_s13 = scalar_lea.sflag (!%p266_p12), [#allocation4], %s1003_s20  ;;  %s839_s14 = scalar_lea.vmem (!%p266_p12), %s1086_s23, 128 }
  0x23   : > { %777 = vmatprep.subr.bf16.mxu0 (!%p266_p12), %v776_v11  ;;  %v448_v58 = vld [vmem:[%s1131_s3 + $0x8] sm:$0xff] (!%p266_p12)  ;;  %v449_v59 = vld [vmem:[%s1131_s3 + $0x10] sm:$0xff] (!%p266_p12)  ;;  %v450_v60 = vld [vmem:[%s1131_s3 + $0x18] sm:$0xff] (!%p266_p12)  ;;  %p840_p13 = scmp.ne.s32.totalorder (!%p266_p12), %s1086_s23, %s839_s14  ;;  %s905_s28 = smov (!%p266_p12), [#allocation3]  }
  0x24   : > { %779 = vmatpush1.bf16.msra.mxu0 (!%p266_p12), %v778_v14  ;;  %324 = vperm.xlu0 (!%p266_p12), %837, %v314_v13   ;;  %s843_s15 = sshll.u32 (!%p266_p12), %s905_s28, 4  ;;  %s844_s15 = int_to_ptr.vmem [resolvable:$false] %s843_s15 }
  0x25   : > { %334 = vperm.xlu1 %838, %v316_v15   ;;  %p841_p0 = pnand %p840_p13, %p984_p6  ;;  %s845_s16 = scalar_lea.vmem %s844_s15, 256 }
  0x26   : > { %p846_p2 = scmp.lt.s32.totalorder %s1086_s23, %s844_s15  ;;  %p847_p3 = scmp.lt.s32.totalorder %s845_s16, %s839_s14 }
  0x27   : > { %760 = vmatmul.mubr.msk.f32.vlgmr.msra.gmra.mrb[0].mxu0 %vm337_vm0, %v309_v16  ;;  %p842_p1 = pneg %p841_p0 }
  0x28   : > { %420 = vmatprep.mubr.f32.mxu0 %v903_v4  ;;  %457 = vperm.xlu0 %837, %v451_v17   ;;  %p848_p4 = por %p847_p3, %p846_p2 }
  0x29   : > { %462 = vperm.xlu1 %838, %v452_v18  }
  0x2a   : > { %p849_p5 = pnand %p848_p4, %p842_p1 }
  0x2b   : > { %761 = vmatmul.mubr.msk.f32.gmra.mrb[2].mxu0 %vm337_vm0, %v310_v19 }
  0x2c   : > { %426 = vmatprep.mubr.f32.mxu0 %v903_v4  ;;  %467 = vperm.xlu0 %837, %v453_v20  }
  0x2d   : > { %472 = vperm.xlu1 %838, %v454_v21  }
  0x2f   : > { %762 = vmatmul.mubr.msk.f32.gmra.mrb[4].mxu0 %vm337_vm0, %v311_v22 }
  0x30   : > { %432 = vmatprep.mubr.f32.mxu0 %v903_v4  ;;  %589 = vperm.xlu0 %837, %v586_v23  }
  0x33   : > { %763 = vmatmul.mubr.msk.f32.gmra.mrb[6].mxu0 %vm337_vm0, %v312_v24 }
  0x34   : > { %659 = vmatprep.mubr.f32.mxu0 %v903_v4 }
  0x9f   : > { %v320_v25 = vpop.permute.xlu0 %319  ;;  %v330_v34 = vpop.permute.xlu1 %329 }
  0xa3   : > { %v325_v29 = vpop.permute.xlu0 %324 }
  0xa4   : > { %v335_v45 = vpop.permute.xlu1 %334 }
  0xa7   : > { %v458_v63 = vpop.permute.xlu0 %457 }
  0xa8   : > { %v463_v1 = vpop.permute.xlu1 %462 }
  0xab   : > { %v468_v14 = vpop.permute.xlu0 %467 }
  0xac   : > { %v473_v17 = vpop.permute.xlu1 %472 }
  0xfa   : > { %v416_v26 = vpop.f32.mrb[0].mxu0 }
  0xfb   : > { %v418_v27 = vpop.f32.mrb[1].mxu0  ;;  %v417_v28 = vadd.f32 %v416_v26, %v320_v25 }
  0xfc   : > { %v419_v30 = vadd.f32 %v418_v27, %v320_v25 }
  0xfd   : > { %v439_v36 = vmax.f32 %v417_v28, 0.0 }
  0xfe   : > { %v422_v31 = vpop.f32.mrb[2].mxu0  ;;  %v440_v38 = vmax.f32 %v419_v30, 0.0  ;;  %v590_v30 = vpop.permute.xlu0 %589 }
  0xff   : > { %v423_v32 = vadd.f32 %v422_v31, %v325_v29  ;;  %v424_v33 = vpop.f32.mrb[3].mxu0 }
 0x100   : > { %v425_v35 = vadd.f32 %v424_v33, %v325_v29  ;;  %v585_v29 = vld [vmem:[%s1133_s5] sm:$0xf] }
 0x101   : > { %v441_v37 = vmax.f32 %v423_v32, 0.0 }
 0x102   : > { %v442_v39 = vmax.f32 %v425_v35, 0.0  ;;  %v428_v40 = vpop.f32.mrb[4].mxu0 }
 0x103   : > { %v430_v41 = vpop.f32.mrb[5].mxu0  ;;  %v782_v42 = vpack.c.bf16 %v441_v37, %v439_v36  ;;  %v429_v44 = vadd.f32 %v428_v40, %v330_v34 }
 0x104   : > { %v780_v43 = vpack.c.bf16 %v442_v39, %v440_v38  ;;  %v431_v46 = vadd.f32 %v430_v41, %v330_v34 }
 0x105   : > { %v443_v51 = vmax.f32 %v429_v44, 0.0 }
 0x106   : > { %v434_v47 = vpop.f32.mrb[6].mxu0  ;;  %781 = vmatprep.subr.bf16.mxu1 %v780_v43  ;;  %v444_v53 = vmax.f32 %v431_v46, 0.0 }
 0x107   : > { %v435_v48 = vadd.f32 %v434_v47, %v335_v45  ;;  %v436_v49 = vpop.f32.mrb[7].mxu0  ;;  %783 = vmatpush1.bf16.msra.mxu1 %v782_v42 }
 0x108   : > { %v437_v50 = vadd.f32 %v436_v49, %v335_v45 }
 0x109   : > { %v445_v52 = vmax.f32 %v435_v48, 0.0 }
 0x10a   : > { %v446_v54 = vmax.f32 %v437_v50, 0.0 }
 0x10b   : > { %v786_v55 = vpack.c.bf16 %v445_v52, %v443_v51 }
 0x10c   : > { %v784_v56 = vpack.c.bf16 %v446_v54, %v444_v53 }
 0x10e   : > { %785 = vmatprep.subr.bf16.mxu1 %v784_v56 }
 0x10f   : > { %787 = vmatpush1.bf16.msra.mxu1 %v786_v55 }
 0x112   : > { %764 = vmatmul.mubr.msk.f32.vlgmr.msra.gmra.mrb[0].mxu1 %vm475_vm1, %v447_v57 }
 0x113   : > { %558 = vmatprep.mubr.f32.mxu1 %v903_v4 }
 0x116   : > { %765 = vmatmul.mubr.msk.f32.gmra.mrb[2].mxu1 %vm475_vm1, %v448_v58 }
 0x117   : > { %564 = vmatprep.mubr.f32.mxu1 %v903_v4 }
 0x11a   : > { %766 = vmatmul.mubr.msk.f32.gmra.mrb[4].mxu1 %vm475_vm1, %v449_v59 }
 0x11b   : > { %570 = vmatprep.mubr.f32.mxu1 %v903_v4 }
 0x11e   : > { %767 = vmatmul.mubr.msk.f32.gmra.mrb[6].mxu1 %vm475_vm1, %v450_v60 }
 0x1e5   : > { %v554_v61 = vpop.f32.mrb[0].mxu1 }
 0x1e6   : > { %v556_v62 = vpop.f32.mrb[1].mxu1  ;;  %v555_v0 = vadd.f32 %v554_v61, %v458_v63 }
 0x1e7   : > { %v557_v2 = vadd.f32 %v556_v62, %v458_v63 }
 0x1e8   : > { %v577_v8 = vmax.f32 %v555_v0, 0.0 }
 0x1e9   : > { %v560_v3 = vpop.f32.mrb[2].mxu1  ;;  %v578_v10 = vmax.f32 %v557_v2, 0.0 }
 0x1ea   : > { %v561_v5 = vadd.f32 %v560_v3, %v463_v1  ;;  %v562_v6 = vpop.f32.mrb[3].mxu1 }
 0x1eb   : > { %v563_v7 = vadd.f32 %v562_v6, %v463_v1 }
 0x1ec   : > { %v579_v9 = vmax.f32 %v561_v5, 0.0 }
 0x1ed   : > { %v580_v4 = vmax.f32 %v563_v7, 0.0  ;;  %v566_v11 = vpop.f32.mrb[4].mxu1 }
 0x1ee   : > { %v790_v12 = vpack.c.bf16 %v579_v9, %v577_v8  ;;  %v568_v13 = vpop.f32.mrb[5].mxu1  ;;  %v567_v16 = vadd.f32 %v566_v11, %v468_v14 }
 0x1ef   : > { %v788_v15 = vpack.c.bf16 %v580_v4, %v578_v10  ;;  %v569_v18 = vadd.f32 %v568_v13, %v468_v14 }
 0x1f0   : > { %v581_v23 = vmax.f32 %v567_v16, 0.0 }
 0x1f1   : > { %v572_v19 = vpop.f32.mrb[6].mxu1  ;;  %789 = vmatprep.subr.bf16.mxu0 %v788_v15  ;;  %v582_v25 = vmax.f32 %v569_v18, 0.0 }
 0x1f2   : > { %v573_v20 = vadd.f32 %v572_v19, %v473_v17  ;;  %v574_v21 = vpop.f32.mrb[7].mxu1  ;;  %791 = vmatpush1.bf16.msra.mxu0 %v790_v12 }
 0x1f3   : > { %v575_v22 = vadd.f32 %v574_v21, %v473_v17 }
 0x1f4   : > { %v583_v24 = vmax.f32 %v573_v20, 0.0 }
 0x1f5   : > { %v584_v26 = vmax.f32 %v575_v22, 0.0 }
 0x1f6   : > { %v794_v27 = vpack.c.bf16 %v583_v24, %v581_v23 }
 0x1f7   : > { %v792_v28 = vpack.c.bf16 %v584_v26, %v582_v25 }
 0x1f9   : > { %793 = vmatprep.subr.bf16.mxu0 %v792_v28 }
 0x1fa   : > { %795 = vmatpush1.bf16.msra.mxu0 %v794_v27 }
 0x1fd   : > { %768 = vmatmul.mubr.msk.f32.vlgmr.msra.gmra.mrb[8].mxu0 %vm475_vm1, %v585_v29 }
 0x2d0   : > { %v661_v31 = vpop.f32.mrb[8].mxu0 }
 0x2d1   : > { %v662_v32 = vadd.f32 %v661_v31, %v590_v30  ;;  %v663_v33 = vpop.f32.mrb[9].mxu0 }
 0x2d2   : > { %v664_v34 = vadd.f32 %v663_v33, %v590_v30 }
 0x2d4   : > { %v668_v35 = vcombine.low %v662_v32, %v664_v34 }
 0x2d6   : > { %670 = vst [vmem:[%s302_s22] sm:$0xff] %v668_v35 }
 0x2d7   : > { %852 = shalt.err (!%p849_p5)
}
 0x2d8   : > { %s853_s20 = scalar_lea.hbm %s1084_s9, 128  ;;  %s857_s19 = scalar_lea.hbm %s1135_s7, 256 }
 0x2d9   : > { %p854_p7 = scmp.ne.s32.totalorder %s1084_s9, %s853_s20  ;;  %p858_p12 = scmp.lt.u32.totalorder %s1084_s9, %s1135_s7 }
 0x2da   : > { %p859_p13 = scmp.lt.u32.totalorder %s857_s19, %s853_s20  ;;  %p861_p1 = scmp.lt.u32.totalorder %s853_s20, %s1084_s9 }
 0x2db   : > { %p855_p10 = pnand %p854_p7, %p984_p6 }
 0x2dc   : > { %p860_p0 = por %p859_p13, %p858_p12 }
 0x2dd   : > { %p856_p11 = pneg %p855_p10 }
 0x2de   : > { %p862_p2 = por %p861_p1, %p860_p0 }
 0x2e0   : > { %p863_p3 = pnand %p862_p2, %p856_p11 }
 0x2e2   : > { %866 = shalt.err (!%p863_p3)
}
 0x2e3   : > { %796 = dma.vmem_to_hbm [thread:$0]  (%p984_p6), %s1086_s23, 128, %s1084_s9, %s672_s13  }
 0x2e4 PF: > { %s698_s29 = sand.u32 1, %s889_s24   ;;  %p799_p4 = pnand %p753_p9, %p988_p8 }
 0x2e5   : > { %s699_s8 = scalar_lea.sflag [#allocation4], %s698_s29 }
 0x2e6   : > { %884 = dma.done.wait (!%p799_p4), %s699_s8, 128  }
 0x2e7   : > { %886 = vsyncadd (!%p799_p4), %s699_s8, 4294967168  ;;  %p17_p5 = scmp.ge.s32.totalorder %s969_s30, 4   ;;  %s1138_s24 = smov %s893_s25 }
 0x2e8   : > { %s1139_s25 = smov %s897_s26  ;;  %s1140_s26 = smov %s982_s10 }
 0x2e9   : > { %s1141_s27 = smov %s969_s30  ;;  %19 = sbr.rel (!%p17_p5) target bundleno = 3 (0x3), region = 111 }
 0x2f0   :  { %704 = vsyncpa [#allocation4], 1 }
 0x2f1   :  { %706 = vsyncpa [#allocation4 + $0x1], 1 }

</bundles_post_ra>
